<compile_context>
chip_gen: v5e
topology: v5e:2x2
jax: 0.10.0
libtpu: 0.0.40
codegen_flags: <defaults>
</compile_context>

<pallas_src>
import math

import jax
import jax.numpy as jnp
from jax import lax
from jax.experimental import pallas as pl
from jax.experimental.pallas import tpu as pltpu

# Packed-parameter layout (single (32, 128) f32 slab):
#   rows 0:2,  lanes 0:4  -> W1      (dim=2, 4)
#   row  2,    lanes 0:4  -> b1      (1, 4)
#   rows 3:7,  lanes 0:16 -> W2      (4, 16)
#   row  7,    lanes 0:16 -> b2      (1, 16)
#   rows 8:24, lanes 0:4  -> W_head  = [W3@Wmu | W3@Wlv | 0 | 0] (16, 4)
#   row  24,   lanes 0:4  -> b_head  = [b3@Wmu+bmu | b3@Wlv+blv | 0 | 0] (1, 4)
PACK_ROWS = 32
PACK_LANES = 128
OUT_LANES = 4          # lane 0 = mu, 1 = logvar, 2 = z, 3 = pad
DEFAULT_BLOCK_ROWS = 2048


def encoder_kernel(x_ref, p_ref, noise_ref, out_ref):
    x = x_ref[...]                       # (TB, 2)

    w1 = p_ref[0:2, 0:4]                 # (2, 4)
    b1 = p_ref[2:3, 0:4]                 # (1, 4)
    w2 = p_ref[3:7, 0:16]                # (4, 16)
    b2 = p_ref[7:8, 0:16]                # (1, 16)
    wh = p_ref[8:24, 0:OUT_LANES]        # (16, 4)  fused+padded head weights
    bh = p_ref[24:25, 0:OUT_LANES]       # (1, 4)   fused+padded head bias

    # Layer 1: Linear(dim=2, 4) + ReLU via VPU broadcast-FMAs (no MXU trip).
    h = x[:, 0:1] * w1[0:1, :] + x[:, 1:2] * w1[1:2, :] + b1
    h = jnp.maximum(h, 0.0)

    # Layer 2: Linear(4, 16) + ReLU on the MXU.
    h = jnp.dot(h, w2, preferred_element_type=jnp.float32) + b2
    h = jnp.maximum(h, 0.0)

    # Fused tail: Linear(16, 8) folded into both heads -> single 16->4 matmul.
    # Columns: 0 = mu, 1 = logvar, 2..3 = 0 (zero-padded weights/bias).
    heads = jnp.dot(h, wh, preferred_element_type=jnp.float32) + bh

    mu = heads[:, 0:1]
    lv = heads[:, 1:2]
    z = mu + jnp.exp(lv) * noise_ref[...]

    # Single fused output slab: lane 0 = mu, lane 1 = logvar, lane 2 = z.
    col = lax.broadcasted_iota(jnp.int32, heads.shape, 1)
    out_ref[...] = jnp.where(col == 2, z, heads)


def init_linear(key, fan_in, fan_out):
    """PyTorch-style uniform(-1/sqrt(fan_in), 1/sqrt(fan_in)) init.

    W is (fan_in, fan_out) (transposed vs torch), b is (1, fan_out).
    """
    kw, kb = jax.random.split(key)
    bound = 1.0 / math.sqrt(fan_in)
    w = jax.random.uniform(kw, (fan_in, fan_out), jnp.float32, -bound, bound)
    b = jax.random.uniform(kb, (1, fan_out), jnp.float32, -bound, bound)
    return w, b


def pack_params(params):
    """Fold W3/b3 into the mu/logvar heads and pack everything into one slab."""
    (w1, b1), (w2, b2), (w3, b3), (wmu, bmu), (wlv, blv) = params
    w_head = jnp.concatenate([w3 @ wmu, w3 @ wlv], axis=1)              # (16, 2)
    b_head = jnp.concatenate([b3 @ wmu + bmu, b3 @ wlv + blv], axis=1)  # (1, 2)

    p = jnp.zeros((PACK_ROWS, PACK_LANES), jnp.float32)
    p = p.at[0:2, 0:4].set(w1)
    p = p.at[2:3, 0:4].set(b1)
    p = p.at[3:7, 0:16].set(w2)
    p = p.at[7:8, 0:16].set(b2)
    p = p.at[8:24, 0:2].set(w_head)
    p = p.at[24:25, 0:2].set(b_head)
    return p


def _round_up(n, m):
    return ((n + m - 1) // m) * m


def encoder_forward(x, packed_params, noise, *, block_rows=DEFAULT_BLOCK_ROWS):
    """x: (B, dim) f32; noise: (B, 1) f32 ~ N(0,1).

    Returns the fused (B, 4) slab: lane 0 = mu, 1 = logvar, 2 = z, 3 = pad.
    Slice lazily (see split_outputs) to avoid extra HBM passes.
    """
    B = x.shape[0]
    # Row tile: multiple of 8 sublanes, capped at block_rows.
    tb = min(block_rows, _round_up(B, 8))
    b_pad = _round_up(B, tb)
    if b_pad != B:
        pad = b_pad - B
        x = jnp.pad(x, ((0, pad), (0, 0)))
        noise = jnp.pad(noise, ((0, pad), (0, 0)))
    grid = (b_pad // tb,)

    out = pl.pallas_call(
        encoder_kernel,
        out_shape=jax.ShapeDtypeStruct((b_pad, OUT_LANES), jnp.float32),
        grid=grid,
        in_specs=[
            pl.BlockSpec((tb, x.shape[1]), lambda i: (i, 0)),
            # Constant index_map: the 16 KiB param slab stays VMEM-resident
            # across all grid steps (no per-tile re-DMA).
            pl.BlockSpec((PACK_ROWS, PACK_LANES), lambda i: (0, 0)),
            pl.BlockSpec((tb, 1), lambda i: (i, 0)),
        ],
        out_specs=pl.BlockSpec((tb, OUT_LANES), lambda i: (i, 0)),
        compiler_params=pltpu.CompilerParams(
            dimension_semantics=("parallel",)),
        cost_estimate=pl.CostEstimate(
            flops=2 * b_pad * (2 * 4 + 4 * 16 + 16 * OUT_LANES),
            transcendentals=b_pad,
            bytes_accessed=4 * (b_pad * x.shape[1] + PACK_ROWS * PACK_LANES
                                + b_pad + b_pad * OUT_LANES),
        ),
    )(x, packed_params, noise)

    if b_pad != B:
        out = out[:B]
    return out


def split_outputs(fused):
    """(B, 4) fused slab -> (mu, logvar, z), each (B, 1)."""
    return fused[:, 0:1], fused[:, 1:2], fused[:, 2:3]


def reference_forward(x, params, noise):
    """Pure-JAX reference using the ORIGINAL (unfused) parameters."""
    (w1, b1), (w2, b2), (w3, b3), (wmu, bmu), (wlv, blv) = params
    h = jnp.maximum(x @ w1 + b1, 0.0)
    h = jnp.maximum(h @ w2 + b2, 0.0)
    h = h @ w3 + b3
    mu = h @ wmu + bmu
    lv = h @ wlv + blv
    z = mu + jnp.exp(lv) * noise
    return mu, lv, z


if __name__ == "__main__":
    dim = 2
    batch_size = 8

    root = jax.random.PRNGKey(0)
    kx, kn, k1, k2, k3, k4, k5 = jax.random.split(root, 7)

    # Deterministic parameters (shapes follow the module's __init__).
    params = (
        init_linear(k1, dim, 4),    # encode[0]: Linear(dim, 4)
        init_linear(k2, 4, 16),     # encode[2]: Linear(4, 16)
        init_linear(k3, 16, 8),     # encode[4]: Linear(16, 8)
        init_linear(k4, 8, 1),      # mu head
        init_linear(k5, 8, 1),      # logvar head
    )
    packed = pack_params(params)

    x = jax.random.normal(kx, (batch_size, dim), jnp.float32)
    # torch.randn((batch_size, 1)) equivalent, generated deterministically.
    noise = jax.random.normal(kn, (batch_size, 1), jnp.float32)

    fused = encoder_forward(x, packed, noise)
    jax.block_until_ready(fused)
    mu, logvar, z = split_outputs(fused)

    mu_ref, lv_ref, z_ref = reference_forward(x, params, noise)
    assert fused.shape == (batch_size, OUT_LANES)
    assert mu.shape == (batch_size, 1)
    assert logvar.shape == (batch_size, 1)
    assert z.shape == (batch_size, 1)
    assert jnp.allclose(mu, mu_ref, atol=1e-4, rtol=1e-4)
    assert jnp.allclose(logvar, lv_ref, atol=1e-4, rtol=1e-4)
    assert jnp.allclose(z, z_ref, atol=1e-4, rtol=1e-4)

    print("KERNEL_OK")
</pallas_src>

<mosaic_0001>
module attributes {stable_mosaic.version = 11 : i64} {
  func.func @encoder_kernel(%arg0: i32, %arg1: memref<8x2xf32, #tpu.memory_space<vmem>>, %arg2: memref<32x128xf32, #tpu.memory_space<vmem>>, %arg3: memref<8x1xf32, #tpu.memory_space<vmem>>, %arg4: memref<8x4xf32, #tpu.memory_space<vmem>>) attributes {dimension_semantics = [#tpu.dimension_semantics<parallel>], iteration_bounds = array<i64: 1>, scalar_prefetch = 0 : i64, scratch_operands = 0 : i64, tpu.core_type = #tpu.core_type<tc>, window_params = [{transform_indices = @transform_0, window_bounds = array<i64: 8, 2>}, {pipeline_mode = #tpu.pipeline_mode<synchronous>, transform_indices = @transform_1, window_bounds = array<i64: 32, 128>}, {transform_indices = @transform_2, window_bounds = array<i64: 8, 1>}, {transform_indices = @transform_3, window_bounds = array<i64: 8, 4>}]} {
    %c0 = arith.constant 0 : index
    %c0_0 = arith.constant 0 : index
    %0 = vector.load %arg1[%c0, %c0_0] : memref<8x2xf32, #tpu.memory_space<vmem>>, vector<8x2xf32>
    %c0_1 = arith.constant 0 : index
    %c0_2 = arith.constant 0 : index
    %1 = vector.load %arg2[%c0_1, %c0_2] : memref<32x128xf32, #tpu.memory_space<vmem>>, vector<2x4xf32>
    %c2 = arith.constant 2 : index
    %c0_3 = arith.constant 0 : index
    %2 = vector.load %arg2[%c2, %c0_3] : memref<32x128xf32, #tpu.memory_space<vmem>>, vector<1x4xf32>
    %c3 = arith.constant 3 : index
    %c0_4 = arith.constant 0 : index
    %3 = vector.load %arg2[%c3, %c0_4] : memref<32x128xf32, #tpu.memory_space<vmem>>, vector<4x16xf32>
    %c7 = arith.constant 7 : index
    %c0_5 = arith.constant 0 : index
    %4 = vector.load %arg2[%c7, %c0_5] : memref<32x128xf32, #tpu.memory_space<vmem>>, vector<1x16xf32>
    %c8 = arith.constant 8 : index
    %c0_6 = arith.constant 0 : index
    %5 = vector.load %arg2[%c8, %c0_6] : memref<32x128xf32, #tpu.memory_space<vmem>>, vector<16x4xf32>
    %c24 = arith.constant 24 : index
    %c0_7 = arith.constant 0 : index
    %6 = vector.load %arg2[%c24, %c0_7] : memref<32x128xf32, #tpu.memory_space<vmem>>, vector<1x4xf32>
    %7 = vector.extract_strided_slice %0 {offsets = [0, 0], sizes = [8, 1], strides = [1, 1]} : vector<8x2xf32> to vector<8x1xf32>
    %8 = vector.extract_strided_slice %1 {offsets = [0, 0], sizes = [1, 4], strides = [1, 1]} : vector<2x4xf32> to vector<1x4xf32>
    %9 = vector.broadcast %7 : vector<8x1xf32> to vector<8x4xf32>
    %10 = vector.broadcast %8 : vector<1x4xf32> to vector<8x4xf32>
    %11 = arith.mulf %9, %10 : vector<8x4xf32>
    %12 = vector.extract_strided_slice %0 {offsets = [0, 1], sizes = [8, 1], strides = [1, 1]} : vector<8x2xf32> to vector<8x1xf32>
    %13 = vector.extract_strided_slice %1 {offsets = [1, 0], sizes = [1, 4], strides = [1, 1]} : vector<2x4xf32> to vector<1x4xf32>
    %14 = vector.broadcast %12 : vector<8x1xf32> to vector<8x4xf32>
    %15 = vector.broadcast %13 : vector<1x4xf32> to vector<8x4xf32>
    %16 = arith.mulf %14, %15 : vector<8x4xf32>
    %17 = arith.addf %11, %16 : vector<8x4xf32>
    %18 = vector.broadcast %2 : vector<1x4xf32> to vector<8x4xf32>
    %19 = arith.addf %17, %18 : vector<8x4xf32>
    %cst = arith.constant 0.000000e+00 : f32
    %20 = vector.broadcast %cst : f32 to vector<8x4xf32>
    %21 = arith.maximumf %19, %20 : vector<8x4xf32>
    %cst_8 = arith.constant dense<0.000000e+00> : vector<8x16xf32>
    %22 = tpu.matmul %21, %3, %cst_8 {dimension_numbers = #tpu.dot_dimension_numbers<[1], [0], [0], [1], [0, 0, 1, 1], [], []>} : vector<8x4xf32>, vector<4x16xf32>, vector<8x16xf32> -> vector<8x16xf32>
    %23 = vector.broadcast %4 : vector<1x16xf32> to vector<8x16xf32>
    %24 = arith.addf %22, %23 : vector<8x16xf32>
    %cst_9 = arith.constant 0.000000e+00 : f32
    %25 = vector.broadcast %cst_9 : f32 to vector<8x16xf32>
    %26 = arith.maximumf %24, %25 : vector<8x16xf32>
    %cst_10 = arith.constant dense<0.000000e+00> : vector<8x4xf32>
    %27 = tpu.matmul %26, %5, %cst_10 {dimension_numbers = #tpu.dot_dimension_numbers<[1], [0], [0], [1], [0, 0, 1, 1], [], []>} : vector<8x16xf32>, vector<16x4xf32>, vector<8x4xf32> -> vector<8x4xf32>
    %28 = vector.broadcast %6 : vector<1x4xf32> to vector<8x4xf32>
    %29 = arith.addf %27, %28 : vector<8x4xf32>
    %30 = vector.extract_strided_slice %29 {offsets = [0, 0], sizes = [8, 1], strides = [1, 1]} : vector<8x4xf32> to vector<8x1xf32>
    %31 = vector.extract_strided_slice %29 {offsets = [0, 1], sizes = [8, 1], strides = [1, 1]} : vector<8x4xf32> to vector<8x1xf32>
    %32 = math.exp %31 : vector<8x1xf32>
    %c0_11 = arith.constant 0 : index
    %c0_12 = arith.constant 0 : index
    %33 = vector.load %arg3[%c0_11, %c0_12] : memref<8x1xf32, #tpu.memory_space<vmem>>, vector<8x1xf32>
    %34 = arith.mulf %32, %33 : vector<8x1xf32>
    %35 = arith.addf %30, %34 : vector<8x1xf32>
    %36 = tpu.iota {dimensions = array<i32: 1>} : vector<8x4xi32>
    %c2_i32 = arith.constant 2 : i32
    %37 = vector.broadcast %c2_i32 : i32 to vector<8x4xi32>
    %38 = arith.cmpi eq, %36, %37 : vector<8x4xi32>
    %39 = vector.shape_cast %35 : vector<8x1xf32> to vector<8x1xf32>
    %40 = vector.broadcast %39 : vector<8x1xf32> to vector<8x4xf32>
    %41 = arith.select %38, %40, %29 : vector<8x4xi1>, vector<8x4xf32>
    %c0_13 = arith.constant 0 : index
    %c0_14 = arith.constant 0 : index
    %42 = vector.load %arg4[%c0_13, %c0_14] : memref<8x4xf32, #tpu.memory_space<vmem>>, vector<8x4xf32>
    tpu.vector_store %arg4[%c0_13, %c0_14], %41 {strides = array<i32>} : memref<8x4xf32, #tpu.memory_space<vmem>>, vector<8x4xf32>,
    return
  }
  func.func @transform_0(%arg0: i32) -> (i32, i32) {
    %c0_i32 = arith.constant 0 : i32
    %c0_i32_0 = arith.constant 0 : i32
    return %arg0, %c0_i32 : i32, i32
  }
  func.func @transform_1(%arg0: i32) -> (i32, i32) {
    %c0_i32 = arith.constant 0 : i32
    %c0_i32_0 = arith.constant 0 : i32
    %c0_i32_1 = arith.constant 0 : i32
    return %c0_i32, %c0_i32_0 : i32, i32
  }
  func.func @transform_2(%arg0: i32) -> (i32, i32) {
    %c0_i32 = arith.constant 0 : i32
    %c0_i32_0 = arith.constant 0 : i32
    return %arg0, %c0_i32 : i32, i32
  }
  func.func @transform_3(%arg0: i32) -> (i32, i32) {
    %c0_i32 = arith.constant 0 : i32
    %c0_i32_0 = arith.constant 0 : i32
    return %arg0, %c0_i32 : i32, i32
  }
}

</mosaic_0001>

<bundles_post_ra>
// kernel: tpu_custom_call.1
= control target key start
LH: loop header
LB: loop body
LE: loop exit
PB: predicated region body
PF: predicated region fallthrough
CT: control target
= control target key end

     0   :  { %8 = vsyncpa [#allocation3], 0  ;;  %s183_s15 = smov [#allocation2]   ;;  %s184_s17 = smov 128   ;;  %s224_s0 = inlined_call_operand.vmem [shape: f32[8,2], index: 0, kind: input, shape index: {}]   ;;  %s225_s1 = inlined_call_operand.hbm [shape: f32[32,128], index: 1, kind: input, shape index: {}]   ;;  %s226_s2 = inlined_call_operand.vmem [shape: f32[8,1], index: 2, kind: input, shape index: {}]   ;;  %s227_s3 = inlined_call_operand.vmem [shape: f32[8,4], index: 3, kind: output, shape index: {}]  }
   0x1   :  { %s15_s14 = sshll.u32 %s225_s1, 4  ;;  %s17_s16 = sshll.u32 %s183_s15, 4  ;;  %s16_s14 = int_to_ptr.hbm [resolvable:$true] %s15_s14  ;;  %s18_s16 = int_to_ptr.vmem [resolvable:$true] %s17_s16 }
   0x2   :  { %s185_s18 = smov 8  }
   0x3   :  { %23 = dma.hbm_to_vmem [thread:$0]  %s16_s14, 512, %s18_s16, [#allocation3], %s184_s17, %s184_s17, %s185_s18  }
   0x4   :  { %181 = dma.done.wait [#allocation3], 512  }
   0x5   :  { %182 = vsyncadd [#allocation3], 4294966784  ;;  %v186_v0 = vmov 0   ;;  %v30_v1 = vld [vmem:[%s224_s0] sm:$0xff]  ;;  %v187_v2 = vmov 1   ;;  %vm60_vm0 = vcmask 1043456   ;;  %v123_v31 = vlaneseq }
   0x6   :  { %148 = vset.pattern.permute.xlu0 %v186_v0  ;;  %150 = vset.pattern.permute.xlu2 %v186_v0  ;;  %v33_v3 = vld [vmem:[#allocation2 + $0x3] sm:$0xf]  ;;  %v31_v5 = vld [vmem:[#allocation2] sm:$0x3]  ;;  %v152_v11 = vld [vmem:[#allocation2 + $0x2] ss:$0 sm:$0xff] }
   0x7   :  { %40 = vperm.xlu0 %148, %v30_v1   ;;  %138 = vmatpush.msk.msra.mxu0 %vm60_vm0, %v33_v3  ;;  %v43_v6 = vperm.slane %v31_v5, 0  ;;  %v49_v7 = vperm.slane %v31_v5, 1  ;;  %vm56_vm1 = vcmask 31744   ;;  %v36_v15 = vld [vmem:[#allocation2 + $0x10] sm:$0xff]  ;;  %v35_v16 = vld [vmem:[#allocation2 + $0x8] sm:$0xff]  ;;  %v112_v17 = vld [vmem:[%s226_s2] sm:$0xff] }
   0x8   :  { %104 = vmatpush.msra.mxu1 %v36_v15  ;;  %s188_s21 = smov 1   ;;  %v153_v18 = vld [vmem:[#allocation2 + $0x7] ss:$0 sm:$0xff]  ;;  %vm86_vm2 = vcmask 130048   ;;  %v154_v22 = vld [vmem:[#allocation2 + $0x18] ss:$0 sm:$0xff] }
   0x9   :  { %114 = vrot.lane.b32.xlu1 %v112_v17, %s188_s21  ;;  %s189_s22 = smov 127   ;;  %v124_v32 = vand.u32 127, %v123_v31 }
   0xa   :  { %105 = vmatpush.msra.mxu1 %v35_v16 }
   0xb   :  { %vm125_vm3 = vcmp.eq.s32.totalorder %v124_v32, 2 }
   0xf   :  { %149 = vset.pattern.permute.xlu0 %v187_v2 }
  0x10   :  { %46 = vperm.xlu0 %149, %v30_v1  }
  0x18   :  { %151 = vset.pattern.permute.xlu0 %v186_v0 }
  0x79   :  { %v41_v4 = vpop.permute.xlu0 %40 }
  0x7a   :  { %v44_v9 = vmul.f32 %v43_v6, %v41_v4 }
  0x7b   :  { %v115_v26 = vpop.permute.xlu1 %114 }
  0x82   :  { %v47_v8 = vpop.permute.xlu0 %46 }
  0x83   :  { %v50_v10 = vmul.f32 %v49_v7, %v47_v8 }
  0x85   :  { %v51_v12 = vadd.f32 %v50_v10, %v44_v9 }
  0x87   :  { %v53_v13 = vadd.f32 %v152_v11, %v51_v12 }
  0x89   :  { %v54_v14 = vmax.f32 %v53_v13, 0.0 }
  0x8b   :  { %139 = vmatmul.msk.f32.vlgmr.msra.gmra.mxu0 %vm56_vm1, %v54_v14 }
 0x108   :  { %v81_v19 = vpop.f32.mrf.mxu0 }
 0x109   :  { %v82_v20 = vadd.f32 %v153_v18, %v81_v19 }
 0x10b   :  { %v84_v21 = vmax.f32 %v82_v20, 0.0 }
 0x10d   :  { %140 = vmatmul.msk.f32.vlgmr.msra.gmra.mxu1 %vm86_vm2, %v84_v21 }
 0x18a   :  { %v107_v23 = vpop.f32.mrf.mxu1 }
 0x18b   :  { %v108_v24 = vadd.f32 %v154_v22, %v107_v23 }
 0x18d   :  { %v110_v25 = vmul.f32 1.442695, %v108_v24 }
 0x18f   :  { %155 = vpow2.f32 %v110_v25 }
 0x195   :  { %v156_v27 = vpop.eup %155 }
 0x196   :  { %v117_v28 = vmul.f32 %v156_v27, %v115_v26 }
 0x198   :  { %119 = vrot.lane.b32.xlu1 %v117_v28, %s189_s22 }
 0x20a   :  { %v120_v29 = vpop.permute.xlu1 %119 }
 0x20b   :  { %v122_v30 = vadd.f32 %v120_v29, %v108_v24 }
 0x20d   :  { %128 = vperm.xlu2 %150, %v122_v30  }
 0x267   :  { %v129_v33 = vpop.permute.xlu2 %128 }
 0x268   :  { %v131_v34 = vsel %vm125_vm3, %v129_v33, %v108_v24 }
 0x269   :  { %132 = vst.msk [vmem:[%s227_s3] sm:$0xff] %vm56_vm1, %v131_v34 }
 0x26a   :  { %137 = vsyncpa [#allocation3], 1 }

</bundles_post_ra>
